<compile_context>
chip_gen: v7x
topology: tpu7x:2x2x1
jax: 0.10.0
libtpu: 0.0.40
codegen_flags: <defaults>
</compile_context>

<pallas_src>
import functools

import jax
import jax.numpy as jnp
from jax.experimental import pallas as pl
from jax.experimental.pallas import tpu as pltpu


LANE = 128            # TPU vreg lane width
# Row offsets inside the packed weight slab (all 8-sublane aligned).
ROW_W_ENC = 0         # [128, 128]  encoder weight (D_in x hidden, zero padded)
ROW_W_MULV = 128      # [128, 128]  fused [w_mu | w_lv] (hidden x 2L, padded)
ROW_W_FOLD = 256      # [128, 128]  folded w_dec @ w_out (L x D_out, padded)
ROW_B_ENC = 384       # row 384: encoder bias
ROW_B_MULV = 392      # row 392: fused [b_mu | b_lv]
ROW_B_FOLD = 400      # row 400: folded bias
SLAB_ROWS = 408


# ----------------------------- Pallas kernel --------------------------------
def vae_fwd_kernel(latent, d_in, off_mu, off_emb, off_z,
                   xe_ref, w_ref, out_ref):
    # Static slices of the pinned weight slab (zero-cost views into VMEM).
    w_enc = w_ref[ROW_W_ENC:ROW_W_ENC + LANE, :]
    w_mulv = w_ref[ROW_W_MULV:ROW_W_MULV + LANE, :]
    w_fold = w_ref[ROW_W_FOLD:ROW_W_FOLD + LANE, :]
    b_enc = w_ref[ROW_B_ENC:ROW_B_ENC + 1, :]
    b_mulv = w_ref[ROW_B_MULV:ROW_B_MULV + 1, :]
    b_fold = w_ref[ROW_B_FOLD:ROW_B_FOLD + 1, :]

    # Packed input: x in lanes [0, d_in), eps in [d_in, d_in+latent), 0 beyond.
    xe = xe_ref[...]                                            # [TB, 128]

    # encoder(x): tanh(Linear(D_in -> hidden)).  The eps lanes multiply
    # all-zero weight rows, so they do not contaminate the product; padded
    # output lanes stay exactly 0 (tanh(0 + 0) = 0).
    emb = jnp.tanh(
        jnp.dot(xe, w_enc, preferred_element_type=jnp.float32) + b_enc
    )

    # Fused enc_mu / enc_log_var: one matmul, mu at lanes [0,L), lv at [L,2L);
    # lanes >= 2L are exactly 0 (zero weight columns + zero bias).
    mulv = jnp.dot(emb, w_mulv, preferred_element_type=jnp.float32) + b_mulv
    lane_idx = jax.lax.broadcasted_iota(jnp.int32, mulv.shape, 1)
    in_latent = lane_idx < latent

    # log_var aligned to lanes [0, L); mask protects exp() on garbage lanes.
    lv = jnp.where(in_latent, pltpu.roll(mulv, LANE - latent, 1), 0.0)
    # eps re-aligned from lanes [d_in, d_in+L) to [0, L); masked so wrapped-in
    # x data does not leak into the reparametrization.
    eps = jnp.where(in_latent, pltpu.roll(xe, LANE - d_in, 1), 0.0)

    # reparametrize: z = mu + exp(0.5 * log_var) * eps.  mu is left unmasked
    # (mulv); its lanes >= L only feed zero rows of w_fold and are masked once
    # below when packing the z output segment.
    sigma = jnp.exp(0.5 * lv)
    z = mulv + sigma * eps

    # Folded fc_dec + decoder: outs = z @ (w_dec @ w_out) + (b_dec @ w_out + b_out)
    # Nonzero only in lanes [0, d_out).
    outs = jnp.dot(z, w_fold, preferred_element_type=jnp.float32) + b_fold

    # Pack all five results into ONE 128-lane segment:
    #   [0, d_out) outs | [off_mu, +L) mu | [off_mu+L, +L) lv |
    #   [off_emb, +hidden) emb | [off_z, +L) z
    # Each addend is zero outside its own lane range, so a plain sum works.
    z_seg = jnp.where(in_latent, z, 0.0)
    packed = (outs
              + pltpu.roll(mulv, off_mu, 1)      # mu|lv land contiguously
              + pltpu.roll(emb, off_emb, 1)
              + pltpu.roll(z_seg, off_z, 1))
    out_ref[...] = packed                        # one unmasked full-width store


# ------------------------------ Wrapper --------------------------------------
def vae_forward(x, w_slab, eps, *, latent_dim, d_out, hidden=50,
                batch_tile=4096):
    """Fused VAE forward. Returns (outs, mu, log_var, embeddings, z)."""
    B, d_in = x.shape
    assert d_in <= LANE and hidden <= LANE
    assert 2 * latent_dim <= LANE and d_out <= LANE
    assert d_in + latent_dim <= LANE                 # packed-input invariant

    # Output lane offsets inside the single packed 128-lane segment.
    off_mu = d_out
    off_lv = d_out + latent_dim
    off_emb = d_out + 2 * latent_dim
    off_z = off_emb + hidden
    assert off_z + latent_dim <= LANE                # 106 <= 128 for defaults

    # Tile selection: keep >= 2 grid steps along the 'parallel' axis whenever
    # B allows it (v7x megacore sharding); cap at batch_tile for VMEM safety.
    tb = min(batch_tile, max(8, ((pl.cdiv(B, 2) + 7) // 8) * 8))
    b_pad = pl.cdiv(B, tb) * tb

    # Single packed input slab: x in lanes [0,d_in), eps in [d_in,d_in+L),
    # zeros elsewhere (padding lanes MUST stay zero for the in-kernel masks).
    xe = jnp.zeros((b_pad, LANE), jnp.float32)
    xe = xe.at[:B, :d_in].set(x)
    xe = xe.at[:B, d_in:d_in + latent_dim].set(eps)

    cost = pl.CostEstimate(
        flops=2 * b_pad * 3 * LANE * LANE,
        transcendentals=2 * b_pad * LANE,             # tanh + exp
        bytes_accessed=4 * (xe.size + w_slab.size + b_pad * LANE),
    )

    out_slab = pl.pallas_call(
        functools.partial(vae_fwd_kernel, latent_dim, d_in,
                          off_mu, off_emb, off_z),
        out_shape=jax.ShapeDtypeStruct((b_pad, LANE), jnp.float32),
        grid_spec=pltpu.PrefetchScalarGridSpec(
            num_scalar_prefetch=0,
            grid=(b_pad // tb,),
            in_specs=[
                pl.BlockSpec((tb, LANE), lambda i: (i, 0)),          # x|eps
                pl.BlockSpec((SLAB_ROWS, LANE), lambda i: (0, 0)),   # weights (pinned)
            ],
            out_specs=pl.BlockSpec((tb, LANE), lambda i: (i, 0)),
        ),
        compiler_params=pltpu.CompilerParams(
            dimension_semantics=("parallel",),        # megacore on v7x
        ),
        cost_estimate=cost,
    )(xe, w_slab)

    outs = out_slab[:B, :d_out]
    mu = out_slab[:B, off_mu:off_mu + latent_dim]
    log_var = out_slab[:B, off_lv:off_lv + latent_dim]
    emb = out_slab[:B, off_emb:off_emb + hidden]
    z = out_slab[:B, off_z:off_z + latent_dim]
    return outs, mu, log_var, emb, z


# ------------------------- Param init & packing -------------------------------
def _linear_params(key, fan_in, fan_out):
    # PyTorch nn.Linear default: U(-1/sqrt(fan_in), 1/sqrt(fan_in)).
    kw, kb = jax.random.split(key)
    bound = 1.0 / jnp.sqrt(jnp.float32(fan_in))
    w = jax.random.uniform(kw, (fan_in, fan_out), jnp.float32, -bound, bound)
    b = jax.random.uniform(kb, (1, fan_out), jnp.float32, -bound, bound)
    return w, b


def init_vae_params(key, d_in=32, latent_dim=8, d_out=32, hidden=50):
    keys = jax.random.split(key, 5)
    w_enc, b_enc = _linear_params(keys[0], d_in, hidden)
    w_mu, b_mu = _linear_params(keys[1], hidden, latent_dim)
    w_lv, b_lv = _linear_params(keys[2], hidden, latent_dim)
    w_dec, b_dec = _linear_params(keys[3], latent_dim, hidden)
    w_out, b_out = _linear_params(keys[4], hidden, d_out)
    return dict(w_enc=w_enc, b_enc=b_enc, w_mu=w_mu, b_mu=b_mu,
                w_lv=w_lv, b_lv=b_lv, w_dec=w_dec, b_dec=b_dec,
                w_out=w_out, b_out=b_out)


def pack_vae_params(params, *, d_in, latent_dim, hidden, d_out):
    """Pack all weights/biases into a single lane-dense [408, 128] f32 slab."""
    hp = jax.lax.Precision.HIGHEST
    slab = jnp.zeros((SLAB_ROWS, LANE), jnp.float32)
    # encoder Linear
    slab = slab.at[ROW_W_ENC:ROW_W_ENC + d_in, :hidden].set(params["w_enc"])
    slab = slab.at[ROW_B_ENC, :hidden].set(params["b_enc"][0])
    # fused [enc_mu | enc_log_var]
    slab = slab.at[ROW_W_MULV:ROW_W_MULV + hidden, :latent_dim].set(params["w_mu"])
    slab = slab.at[ROW_W_MULV:ROW_W_MULV + hidden,
                   latent_dim:2 * latent_dim].set(params["w_lv"])
    slab = slab.at[ROW_B_MULV, :latent_dim].set(params["b_mu"][0])
    slab = slab.at[ROW_B_MULV, latent_dim:2 * latent_dim].set(params["b_lv"][0])
    # folded fc_dec @ decoder (valid only because decoder is a pure Linear)
    w_fold = jnp.dot(params["w_dec"], params["w_out"], precision=hp)
    b_fold = jnp.dot(params["b_dec"], params["w_out"], precision=hp) + params["b_out"]
    slab = slab.at[ROW_W_FOLD:ROW_W_FOLD + latent_dim, :d_out].set(w_fold)
    slab = slab.at[ROW_B_FOLD, :d_out].set(b_fold[0])
    return slab


# ------------------------------ Reference ------------------------------------
def vae_forward_ref(x, params, eps):
    hp = jax.lax.Precision.HIGHEST
    emb = jnp.tanh(jnp.dot(x, params["w_enc"], precision=hp) + params["b_enc"])
    mu = jnp.dot(emb, params["w_mu"], precision=hp) + params["b_mu"]
    lv = jnp.dot(emb, params["w_lv"], precision=hp) + params["b_lv"]
    z = mu + jnp.exp(0.5 * lv) * eps
    up = jnp.dot(z, params["w_dec"], precision=hp) + params["b_dec"]
    outs = jnp.dot(up, params["w_out"], precision=hp) + params["b_out"]
    return outs, mu, lv, emb, z


if __name__ == "__main__":
    B, D_IN, HIDDEN, LATENT, D_OUT = 2, 32, 50, 8, 32

    key = jax.random.PRNGKey(0)
    k_x, k_eps, k_p = jax.random.split(key, 3)

    x = jax.random.normal(k_x, (B, D_IN), jnp.float32)
    eps = jax.random.normal(k_eps, (B, LATENT), jnp.float32)  # == torch.randn in reparametrize
    params = init_vae_params(k_p, d_in=D_IN, latent_dim=LATENT, d_out=D_OUT,
                             hidden=HIDDEN)
    w_slab = pack_vae_params(params, d_in=D_IN, latent_dim=LATENT,
                             hidden=HIDDEN, d_out=D_OUT)

    outs, mu, log_var, embeddings, z = jax.block_until_ready(
        vae_forward(x, w_slab, eps, latent_dim=LATENT, d_out=D_OUT, hidden=HIDDEN)
    )

    # TODO(synk): original decoder returns (outs, grid); grid semantics are
    # decoder-specific and undefined for the synthesized linear decoder.
    grid = None

    ref = vae_forward_ref(x, params, eps)
    names = ("outs", "mu", "log_var", "embeddings", "z")
    for name, got, want in zip(names, (outs, mu, log_var, embeddings, z), ref):
        assert got.shape == want.shape, f"shape mismatch: {name}"
        assert jnp.allclose(got, want, atol=1e-4, rtol=1e-4), f"mismatch: {name}"

    print("KERNEL_OK")
</pallas_src>

<mosaic_0001>
module attributes {stable_mosaic.version = 11 : i64} {
  func.func @vae_fwd_kernel(%arg0: i32, %arg1: memref<8x128xf32, #tpu.memory_space<vmem>>, %arg2: memref<408x128xf32, #tpu.memory_space<vmem>>, %arg3: memref<8x128xf32, #tpu.memory_space<vmem>>) attributes {dimension_semantics = [#tpu.dimension_semantics<parallel>], iteration_bounds = array<i64: 1>, scalar_prefetch = 0 : i64, scratch_operands = 0 : i64, tpu.core_type = #tpu.core_type<tc>, window_params = [{transform_indices = @transform_0, window_bounds = array<i64: 8, 128>}, {pipeline_mode = #tpu.pipeline_mode<synchronous>, transform_indices = @transform_1, window_bounds = array<i64: 408, 128>}, {transform_indices = @transform_2, window_bounds = array<i64: 8, 128>}]} {
    %c0 = arith.constant 0 : index
    %c0_0 = arith.constant 0 : index
    %0 = vector.load %arg2[%c0, %c0_0] : memref<408x128xf32, #tpu.memory_space<vmem>>, vector<128x128xf32>
    %c128 = arith.constant 128 : index
    %c0_1 = arith.constant 0 : index
    %1 = vector.load %arg2[%c128, %c0_1] : memref<408x128xf32, #tpu.memory_space<vmem>>, vector<128x128xf32>
    %c256 = arith.constant 256 : index
    %c0_2 = arith.constant 0 : index
    %2 = vector.load %arg2[%c256, %c0_2] : memref<408x128xf32, #tpu.memory_space<vmem>>, vector<128x128xf32>
    %c384 = arith.constant 384 : index
    %c0_3 = arith.constant 0 : index
    %3 = vector.load %arg2[%c384, %c0_3] : memref<408x128xf32, #tpu.memory_space<vmem>>, vector<1x128xf32>
    %c392 = arith.constant 392 : index
    %c0_4 = arith.constant 0 : index
    %4 = vector.load %arg2[%c392, %c0_4] : memref<408x128xf32, #tpu.memory_space<vmem>>, vector<1x128xf32>
    %c400 = arith.constant 400 : index
    %c0_5 = arith.constant 0 : index
    %5 = vector.load %arg2[%c400, %c0_5] : memref<408x128xf32, #tpu.memory_space<vmem>>, vector<1x128xf32>
    %c0_6 = arith.constant 0 : index
    %c0_7 = arith.constant 0 : index
    %6 = vector.load %arg1[%c0_6, %c0_7] : memref<8x128xf32, #tpu.memory_space<vmem>>, vector<8x128xf32>
    %cst = arith.constant dense<0.000000e+00> : vector<8x128xf32>
    %7 = tpu.matmul %6, %0, %cst {dimension_numbers = #tpu.dot_dimension_numbers<[1], [0], [0], [1], [0, 0, 1, 1], [], []>} : vector<8x128xf32>, vector<128x128xf32>, vector<8x128xf32> -> vector<8x128xf32>
    %8 = vector.broadcast %3 : vector<1x128xf32> to vector<8x128xf32>
    %9 = arith.addf %7, %8 : vector<8x128xf32>
    %10 = math.tanh %9 : vector<8x128xf32>
    %cst_8 = arith.constant dense<0.000000e+00> : vector<8x128xf32>
    %11 = tpu.matmul %10, %1, %cst_8 {dimension_numbers = #tpu.dot_dimension_numbers<[1], [0], [0], [1], [0, 0, 1, 1], [], []>} : vector<8x128xf32>, vector<128x128xf32>, vector<8x128xf32> -> vector<8x128xf32>
    %12 = vector.broadcast %4 : vector<1x128xf32> to vector<8x128xf32>
    %13 = arith.addf %11, %12 : vector<8x128xf32>
    %14 = tpu.iota {dimensions = array<i32: 1>} : vector<8x128xi32>
    %c8_i32 = arith.constant 8 : i32
    %15 = vector.broadcast %c8_i32 : i32 to vector<8x128xi32>
    %16 = arith.cmpi slt, %14, %15 : vector<8x128xi32>
    %c120_i32 = arith.constant 120 : i32
    %17 = tpu.dynamic_rotate %13 by %c120_i32 dim 1 : vector<8x128xf32>, i32 -> vector<8x128xf32>
    %cst_9 = arith.constant 0.000000e+00 : f32
    %18 = vector.broadcast %cst_9 : f32 to vector<8x128xf32>
    %19 = arith.select %16, %17, %18 : vector<8x128xi1>, vector<8x128xf32>
    %c96_i32 = arith.constant 96 : i32
    %20 = tpu.dynamic_rotate %6 by %c96_i32 dim 1 : vector<8x128xf32>, i32 -> vector<8x128xf32>
    %cst_10 = arith.constant 0.000000e+00 : f32
    %21 = vector.broadcast %cst_10 : f32 to vector<8x128xf32>
    %22 = arith.select %16, %20, %21 : vector<8x128xi1>, vector<8x128xf32>
    %cst_11 = arith.constant 5.000000e-01 : f32
    %23 = vector.broadcast %cst_11 : f32 to vector<8x128xf32>
    %24 = arith.mulf %23, %19 : vector<8x128xf32>
    %25 = math.exp %24 : vector<8x128xf32>
    %26 = arith.mulf %25, %22 : vector<8x128xf32>
    %27 = arith.addf %13, %26 : vector<8x128xf32>
    %cst_12 = arith.constant dense<0.000000e+00> : vector<8x128xf32>
    %28 = tpu.matmul %27, %2, %cst_12 {dimension_numbers = #tpu.dot_dimension_numbers<[1], [0], [0], [1], [0, 0, 1, 1], [], []>} : vector<8x128xf32>, vector<128x128xf32>, vector<8x128xf32> -> vector<8x128xf32>
    %29 = vector.broadcast %5 : vector<1x128xf32> to vector<8x128xf32>
    %30 = arith.addf %28, %29 : vector<8x128xf32>
    %cst_13 = arith.constant 0.000000e+00 : f32
    %31 = vector.broadcast %cst_13 : f32 to vector<8x128xf32>
    %32 = arith.select %16, %27, %31 : vector<8x128xi1>, vector<8x128xf32>
    %c32_i32 = arith.constant 32 : i32
    %33 = tpu.dynamic_rotate %13 by %c32_i32 dim 1 : vector<8x128xf32>, i32 -> vector<8x128xf32>
    %34 = arith.addf %30, %33 : vector<8x128xf32>
    %c48_i32 = arith.constant 48 : i32
    %35 = tpu.dynamic_rotate %10 by %c48_i32 dim 1 : vector<8x128xf32>, i32 -> vector<8x128xf32>
    %36 = arith.addf %34, %35 : vector<8x128xf32>
    %c98_i32 = arith.constant 98 : i32
    %37 = tpu.dynamic_rotate %32 by %c98_i32 dim 1 : vector<8x128xf32>, i32 -> vector<8x128xf32>
    %38 = arith.addf %36, %37 : vector<8x128xf32>
    %c0_14 = arith.constant 0 : index
    %c0_15 = arith.constant 0 : index
    %39 = vector.load %arg3[%c0_14, %c0_15] : memref<8x128xf32, #tpu.memory_space<vmem>>, vector<8x128xf32>
    tpu.vector_store %arg3[%c0_14, %c0_15], %38 {strides = array<i32>} : memref<8x128xf32, #tpu.memory_space<vmem>>, vector<8x128xf32>,
    return
  }
  func.func @transform_0(%arg0: i32) -> (i32, i32) {
    %c0_i32 = arith.constant 0 : i32
    %c0_i32_0 = arith.constant 0 : i32
    return %arg0, %c0_i32 : i32, i32
  }
  func.func @transform_1(%arg0: i32) -> (i32, i32) {
    %c0_i32 = arith.constant 0 : i32
    %c0_i32_0 = arith.constant 0 : i32
    %c0_i32_1 = arith.constant 0 : i32
    return %c0_i32, %c0_i32_0 : i32, i32
  }
  func.func @transform_2(%arg0: i32) -> (i32, i32) {
    %c0_i32 = arith.constant 0 : i32
    %c0_i32_0 = arith.constant 0 : i32
    return %arg0, %c0_i32 : i32, i32
  }
}

</mosaic_0001>

<bundles_post_ra>
// kernel: tpu_custom_call.1
= control target key start
LH: loop header
LB: loop body
LE: loop exit
PB: predicated region body
PF: predicated region fallthrough
CT: control target
= control target key end

     0   :  { %7 = vsyncpa [#allocation3], 0  ;;  %s779_s0 = inlined_call_operand.hbm [shape: f32[8,128], index: 0, kind: input, shape index: {}]   ;;  %s780_s1 = inlined_call_operand.hbm [shape: f32[408,128], index: 1, kind: input, shape index: {}]   ;;  %s781_s2 = inlined_call_operand.hbm [shape: f32[8,128], index: 2, kind: output, shape index: {}]  }
   0x1   :  { %8 = vsyncpa [#allocation6], 0 }
   0x2   :  { %9 = vsyncpa [#allocation4], 0  ;;  %s674_s9 = smov [#allocation2]   ;;  %s675_s11 = smov [#allocation5]  }
   0x3   :  { %s16_s10 = sshll.u32 %s674_s9, 4  ;;  %s25_s12 = sshll.u32 %s675_s11, 4  ;;  %s17_s10 = int_to_ptr.vmem [resolvable:$true] %s16_s10  ;;  %s702_s12 = int_to_ptr.vmem [resolvable:$true] %s25_s12 }
   0x4   :  { %s602_s15 = scalar_lea.hbm %s779_s0, 128 }
   0x5   :  { %p603_p0 = scmp.ne.s32.totalorder %s779_s0, %s602_s15  ;;  %p606_p1 = scmp.lt.u32.totalorder %s602_s15, %s779_s0 }
   0x7   :  { %p608_p2 = pnand %p606_p1, %p603_p0 }
   0x9   :  { %611 = shalt.err (!%p608_p2)
}
   0xa   :  { %s612_s20 = scalar_lea.vmem %s17_s10, 128  ;;  %p617_p4 = scmp.lt.s32.totalorder %s17_s10, %s17_s10 }
   0xb   :  { %p613_p3 = scmp.ne.s32.totalorder %s17_s10, %s612_s20  ;;  %p618_p5 = scmp.lt.s32.totalorder %s612_s20, %s612_s20 }
   0xd   :  { %p619_p6 = por %p618_p5, %p617_p4 }
   0xf   :  { %p620_p7 = pnand %p619_p6, %p613_p3 }
  0x11   :  { %623 = shalt.err (!%p620_p7)
}
  0x12   :  { %19 = dma.hbm_to_vmem [thread:$0]  %s779_s0, 128, %s17_s10, [#allocation3]  }
  0x13   :  { %s624_s25 = scalar_lea.hbm %s780_s1, 6528 }
  0x14   :  { %p625_p8 = scmp.ne.s32.totalorder %s780_s1, %s624_s25  ;;  %p628_p9 = scmp.lt.u32.totalorder %s624_s25, %s780_s1 }
  0x16   :  { %p630_p10 = pnand %p628_p9, %p625_p8 }
  0x18   :  { %633 = shalt.err (!%p630_p10)
}
  0x19   :  { %s634_s30 = scalar_lea.vmem %s702_s12, 6528  ;;  %p639_p12 = scmp.lt.s32.totalorder %s702_s12, %s702_s12 }
  0x1a   :  { %p635_p11 = scmp.ne.s32.totalorder %s702_s12, %s634_s30  ;;  %p640_p13 = scmp.lt.s32.totalorder %s634_s30, %s634_s30 }
  0x1c   :  { %p641_p0 = por %p640_p13, %p639_p12 }
  0x1e   :  { %p642_p1 = pnand %p641_p0, %p635_p11 }
  0x20   :  { %645 = shalt.err (!%p642_p1)
}
  0x21   :  { %s676_s0 = smov 128   ;;  %s677_s3 = smov 8  }
  0x22   :  { %31 = dma.hbm_to_vmem [thread:$0]  %s780_s1, 6528, %s702_s12, [#allocation6], %s676_s0, %s676_s0, %s677_s3  }
  0x23   :  { %668 = dma.done.wait [#allocation3], 128  }
  0x24   :  { %669 = vsyncadd [#allocation3], 4294967168 }
  0x25   :  { %670 = dma.done.wait [#allocation6], 6528  }
  0x26   :  { %671 = vsyncadd [#allocation6], 4294960768  ;;  %v678_v0 = vmov 0.0|0.0   ;;  %vm679_vm0 = vmmov 0   ;;  %v680_v1 = vmov 0.0   ;;  %v38_v2 = vld [vmem:[#allocation5] sm:$0xff] }
  0x27   :  { %513 = vmatprep.subr.bf16.mxu0 %v678_v0  ;;  %440 = vmatprep.mubr.msk.f32.mxu0 %vm679_vm0, %v680_v1  ;;  %v39_v3 = vld [vmem:[#allocation5 + $0x8] sm:$0xff]  ;;  %v40_v4 = vld [vmem:[#allocation5 + $0x10] sm:$0xff]  ;;  %v41_v6 = vld [vmem:[#allocation5 + $0x18] sm:$0xff]  ;;  %s681_s1 = smov 32   ;;  %s682_s6 = smov 120  }
  0x28   :  { %537 = vmatprep.subr.bf16.mxu1 %v678_v0  ;;  %475 = vmatprep.mubr.msk.f32.mxu1 %vm679_vm0, %v680_v1  ;;  %v514_v5 = vpack.c.bf16 %v39_v3, %v38_v2  ;;  %v517_v7 = vpack.c.bf16 %v41_v6, %v40_v4  ;;  %v42_v8 = vld [vmem:[#allocation5 + $0x20] sm:$0xff]  ;;  %v43_v9 = vld [vmem:[#allocation5 + $0x28] sm:$0xff]  ;;  %v56_v12 = vld [vmem:[#allocation5 + $0x90] sm:$0xff]  ;;  %s683_s7 = smov 48   ;;  %s684_s8 = smov 96  }
  0x29   :  { %v54_v10 = vld [vmem:[#allocation5 + $0x80] sm:$0xff]  ;;  %v55_v11 = vld [vmem:[#allocation5 + $0x88] sm:$0xff]  ;;  %v57_v13 = vld [vmem:[#allocation5 + $0x98] sm:$0xff]  ;;  %v520_v14 = vpack.c.bf16 %v43_v9, %v42_v8  ;;  %s685_s9 = smov 98   ;;  %s686_s10 = smov [#allocation7]  }
  0x2a   :  { %515 = vmatpush3.bf16.msra.mxu0 %v514_v5  ;;  %v538_v15 = vpack.c.bf16 %v55_v11, %v54_v10  ;;  %v44_v16 = vld [vmem:[#allocation5 + $0x30] sm:$0xff]  ;;  %v45_v17 = vld [vmem:[#allocation5 + $0x38] sm:$0xff]  ;;  %v541_v18 = vpack.c.bf16 %v57_v13, %v56_v12  ;;  %v58_v19 = vld [vmem:[#allocation5 + $0xa0] sm:$0xff]  ;;  %s344_s11 = sshll.u32 %s686_s10, 4  ;;  %s345_s11 = int_to_ptr.vmem [resolvable:$true] %s344_s11 }
  0x2b   :  { %516 = vmatprep.subr.bf16.mxu0 %v678_v0  ;;  %v59_v20 = vld [vmem:[#allocation5 + $0xa8] sm:$0xff]  ;;  %v523_v21 = vpack.c.bf16 %v45_v17, %v44_v16  ;;  %v46_v22 = vld [vmem:[#allocation5 + $0x40] sm:$0xff]  ;;  %v60_v25 = vld [vmem:[#allocation5 + $0xb0] sm:$0xff]  ;;  %s646_s12 = scalar_lea.vmem %s345_s11, 128  ;;  %p651_p3 = scmp.lt.s32.totalorder %s345_s11, %s345_s11 }
  0x2c   :  { %539 = vmatpush3.bf16.msra.mxu1 %v538_v15  ;;  %v47_v23 = vld [vmem:[#allocation5 + $0x48] sm:$0xff]  ;;  %v544_v24 = vpack.c.bf16 %v59_v20, %v58_v19  ;;  %v61_v26 = vld [vmem:[#allocation5 + $0xb8] sm:$0xff]  ;;  %v48_v28 = vld [vmem:[#allocation5 + $0x50] sm:$0xff]  ;;  %p647_p2 = scmp.ne.s32.totalorder %s345_s11, %s646_s12  ;;  %p652_p4 = scmp.lt.s32.totalorder %s646_s12, %s646_s12 }
  0x2d   :  { %540 = vmatprep.subr.bf16.mxu1 %v678_v0  ;;  %v526_v27 = vpack.c.bf16 %v47_v23, %v46_v22  ;;  %v49_v29 = vld [vmem:[#allocation5 + $0x58] sm:$0xff]  ;;  %v547_v30 = vpack.c.bf16 %v61_v26, %v60_v25  ;;  %v62_v31 = vld [vmem:[#allocation5 + $0xc0] sm:$0xff]  ;;  %v63_v32 = vld [vmem:[#allocation5 + $0xc8] sm:$0xff] }
  0x2e   :  { %518 = vmatpush3.bf16.msra.mxu0 %v517_v7  ;;  %v529_v33 = vpack.c.bf16 %v49_v29, %v48_v28  ;;  %v50_v34 = vld [vmem:[#allocation5 + $0x60] sm:$0xff]  ;;  %v51_v35 = vld [vmem:[#allocation5 + $0x68] sm:$0xff]  ;;  %v550_v36 = vpack.c.bf16 %v63_v32, %v62_v31  ;;  %v52_v38 = vld [vmem:[#allocation5 + $0x70] sm:$0xff]  ;;  %p653_p5 = por %p652_p4, %p651_p3 }
  0x2f   :  { %519 = vmatprep.subr.bf16.mxu0 %v678_v0  ;;  %v532_v37 = vpack.c.bf16 %v51_v35, %v50_v34  ;;  %v53_v39 = vld [vmem:[#allocation5 + $0x78] sm:$0xff]  ;;  %v64_v42 = vld [vmem:[#allocation5 + $0xd0] sm:$0xff]  ;;  %v66_v45 = vld [vmem:[#allocation5 + $0xe0] sm:$0xff] }
  0x30   :  { %542 = vmatpush3.bf16.msra.mxu1 %v541_v18  ;;  %v535_v40 = vpack.c.bf16 %v53_v39, %v52_v38  ;;  %v751_v41 = vld [vmem:[#allocation2] sm:$0xff]  ;;  %v67_v46 = vld [vmem:[#allocation5 + $0xe8] sm:$0xff]  ;;  %v68_v48 = vld [vmem:[#allocation5 + $0xf0] sm:$0xff]  ;;  %p654_p6 = pnand %p653_p5, %p647_p2 }
  0x31   :  { %543 = vmatprep.subr.bf16.mxu1 %v678_v0  ;;  %v65_v43 = vld [vmem:[#allocation5 + $0xd8] sm:$0xff]  ;;  %v556_v47 = vpack.c.bf16 %v67_v46, %v66_v45  ;;  %v354_v51 = vld [vmem:[#allocation5 + $0x180] ss:$0 sm:$0xff]  ;;  %v71_v57 = vld [vmem:[#allocation5 + $0x108] sm:$0xff] }
  0x32   :  { %521 = vmatpush3.bf16.msra.mxu0 %v520_v14  ;;  %v553_v44 = vpack.c.bf16 %v65_v43, %v64_v42  ;;  %v69_v49 = vld [vmem:[#allocation5 + $0xf8] sm:$0xff]  ;;  %v70_v56 = vld [vmem:[#allocation5 + $0x100] sm:$0xff]  ;;  %v72_v58 = vld [vmem:[#allocation5 + $0x110] sm:$0xff] }
  0x33   :  { %522 = vmatprep.subr.bf16.mxu0 %v678_v0  ;;  %v559_v50 = vpack.c.bf16 %v69_v49, %v68_v48  ;;  %v562_v59 = vpack.c.bf16 %v71_v57, %v70_v56  ;;  %v73_v60 = vld [vmem:[#allocation5 + $0x118] sm:$0xff]  ;;  %v74_v62 = vld [vmem:[#allocation5 + $0x120] sm:$0xff]  ;;  %v75_v63 = vld [vmem:[#allocation5 + $0x128] sm:$0xff] }
  0x34   :  { %545 = vmatpush3.bf16.msra.mxu1 %v544_v24  ;;  %v565_v61 = vpack.c.bf16 %v73_v60, %v72_v58  ;;  %v76_v2 = vld [vmem:[#allocation5 + $0x130] sm:$0xff]  ;;  %v77_v3 = vld [vmem:[#allocation5 + $0x138] sm:$0xff]  ;;  %v78_v5 = vld [vmem:[#allocation5 + $0x140] sm:$0xff] }
  0x35   :  { %546 = vmatprep.subr.bf16.mxu1 %v678_v0  ;;  %v571_v4 = vpack.c.bf16 %v77_v3, %v76_v2  ;;  %v79_v6 = vld [vmem:[#allocation5 + $0x148] sm:$0xff]  ;;  %v80_v8 = vld [vmem:[#allocation5 + $0x150] sm:$0xff]  ;;  %v81_v9 = vld [vmem:[#allocation5 + $0x158] sm:$0xff] }
  0x36   :  { %524 = vmatpush3.bf16.msra.mxu0 %v523_v21  ;;  %v574_v7 = vpack.c.bf16 %v79_v6, %v78_v5  ;;  %v577_v10 = vpack.c.bf16 %v81_v9, %v80_v8  ;;  %v82_v11 = vld [vmem:[#allocation5 + $0x160] sm:$0xff]  ;;  %v83_v12 = vld [vmem:[#allocation5 + $0x168] sm:$0xff]  ;;  %v84_v18 = vld [vmem:[#allocation5 + $0x170] sm:$0xff]  ;;  %v239_v21 = vlaneseq }
  0x37   :  { %525 = vmatprep.subr.bf16.mxu0 %v678_v0  ;;  %v355_v13 = vld [vmem:[#allocation5 + $0x188] ss:$0 sm:$0xff]  ;;  %v580_v15 = vpack.c.bf16 %v83_v12, %v82_v11  ;;  %v85_v19 = vld [vmem:[#allocation5 + $0x178] sm:$0xff] }
  0x38   :  { %548 = vmatpush3.bf16.msra.mxu1 %v547_v30  ;;  %v583_v20 = vpack.c.bf16 %v85_v19, %v84_v18  ;;  %v240_v22 = vand.u32 127, %v239_v21 }
  0x39   :  { %549 = vmatprep.subr.bf16.mxu1 %v678_v0 }
  0x3a   :  { %527 = vmatpush3.bf16.msra.mxu0 %v526_v27  ;;  %vm241_vm1 = vcmp.lt.s32.totalorder %v240_v22, 8 }
  0x3b   :  { %528 = vmatprep.subr.bf16.mxu0 %v678_v0 }
  0x3c   :  { %551 = vmatpush3.bf16.msra.mxu1 %v550_v36 }
  0x3d   :  { %552 = vmatprep.subr.bf16.mxu1 %v678_v0 }
  0x3e   :  { %530 = vmatpush3.bf16.msra.mxu0 %v529_v33  ;;  %v356_v33 = vld [vmem:[#allocation5 + $0x190] ss:$0 sm:$0xff] }
  0x3f   :  { %531 = vmatprep.subr.bf16.mxu0 %v678_v0 }
  0x40   :  { %554 = vmatpush3.bf16.msra.mxu1 %v553_v44 }
  0x41   :  { %555 = vmatprep.subr.bf16.mxu1 %v678_v0 }
  0x42   :  { %533 = vmatpush3.bf16.msra.mxu0 %v532_v37 }
  0x43   :  { %534 = vmatprep.subr.bf16.mxu0 %v678_v0 }
  0x44   :  { %557 = vmatpush3.bf16.msra.mxu1 %v556_v47 }
  0x45   :  { %558 = vmatprep.subr.bf16.mxu1 %v678_v0 }
  0x46   :  { %536 = vmatpush3.bf16.msra.mxu0 %v535_v40 }
  0x47   :  { %561 = vmatprep.subr.bf16.mxu0 %v678_v0 }
  0x48   :  { %560 = vmatpush3.bf16.msra.mxu1 %v559_v50 }
  0x49   :  { %441 = vmatmul.mubr.f32.vlgmr.msra.gmra.mrb[0].mxu0 %v751_v41 }
  0x4a   :  { %510 = vmatprep.mubr.msk.f32.mxu0 %vm679_vm0, %v680_v1  ;;  %563 = vmatpush3.bf16.msra.mxu0 %v562_v59  ;;  %v568_v1 = vpack.c.bf16 %v75_v63, %v74_v62 }
  0x4b   :  { %564 = vmatprep.subr.bf16.mxu0 %v678_v0 }
  0x4e   :  { %566 = vmatpush3.bf16.msra.mxu0 %v565_v61 }
  0x4f   :  { %567 = vmatprep.subr.bf16.mxu0 %v678_v0 }
  0x52   :  { %569 = vmatpush3.bf16.msra.mxu0 %v568_v1 }
  0x53   :  { %570 = vmatprep.subr.bf16.mxu0 %v678_v0 }
  0x56   :  { %572 = vmatpush3.bf16.msra.mxu0 %v571_v4 }
  0x57   :  { %573 = vmatprep.subr.bf16.mxu0 %v678_v0 }
  0x5a   :  { %575 = vmatpush3.bf16.msra.mxu0 %v574_v7 }
  0x5b   :  { %576 = vmatprep.subr.bf16.mxu0 %v678_v0 }
  0x5e   :  { %578 = vmatpush3.bf16.msra.mxu0 %v577_v10 }
  0x5f   :  { %579 = vmatprep.subr.bf16.mxu0 %v678_v0 }
  0x62   :  { %581 = vmatpush3.bf16.msra.mxu0 %v580_v15 }
  0x63   :  { %582 = vmatprep.subr.bf16.mxu0 %v678_v0 }
  0x66   :  { %584 = vmatpush3.bf16.msra.mxu0 %v583_v20 }
 0x11c   :  { %v160_v52 = vpop.f32.mrb[0].mxu0 }
 0x11d   :  { %v161_v53 = vadd.f32 %v354_v51, %v160_v52  ;;  %v442_v54 = vpop.f32.mrb[1].mxu0 }
 0x11f   :  { %598 = vtanh.f32 %v161_v53 }
 0x129   :  { %v599_v55 = vpop.eup %598 }
 0x12a   :  { %476 = vmatmul.mubr.f32.vlgmr.msra.gmra.mrb[0].mxu1 %v599_v55 }
 0x1fd   :  { %v235_v14 = vpop.f32.mrb[0].mxu1 }
 0x1fe   :  { %v236_v16 = vadd.f32 %v355_v13, %v235_v14  ;;  %v477_v17 = vpop.f32.mrb[1].mxu1 }
 0x200   :  { %328 = vrot.lane.b32.xlu1 %v236_v16, %s681_s1  ;;  %242 = vrot.lane.b32.xlu0 %v236_v16, %s682_s6 }
 0x204   :  { %331 = vrot.lane.b32.xlu1 %v599_v55, %s683_s7  ;;  %245 = vrot.lane.b32.xlu0 %v751_v41, %s684_s8 }
 0x272   :  { %v243_v23 = vpop.permute.xlu0 %242  ;;  %v329_v32 = vpop.permute.xlu1 %328 }
 0x273   :  { %v244_v24 = vsel %vm241_vm1, %v243_v23, 0.0 }
 0x274   :  { %v248_v25 = vmul.f32 0.5, %v244_v24 }
 0x276   :  { %v249_v26 = vmul.f32 1.442695, %v248_v25  ;;  %v246_v27 = vpop.permute.xlu0 %245  ;;  %v332_v38 = vpop.permute.xlu1 %331 }
 0x277   :  { %v247_v28 = vsel %vm241_vm1, %v246_v27, 0.0 }
 0x278   :  { %600 = vpow2.f32 %v249_v26 }
 0x282   :  { %v601_v29 = vpop.eup %600 }
 0x283   :  { %v251_v30 = vmul.f32 %v601_v29, %v247_v28 }
 0x285   :  { %v252_v0 = vadd.f32 %v251_v30, %v236_v16 }
 0x287   :  { %511 = vmatmul.mubr.f32.vlgmr.msra.gmra.mrb[2].mxu0 %v252_v0  ;;  %v327_v31 = vsel %vm241_vm1, %v252_v0, 0.0 }
 0x288   :  { %334 = vrot.lane.b32.xlu0 %v327_v31, %s685_s9 }
 0x2fa   :  { %v335_v40 = vpop.permute.xlu0 %334 }
 0x35a   :  { %v323_v34 = vpop.f32.mrb[2].mxu0 }
 0x35b   :  { %v324_v35 = vadd.f32 %v356_v33, %v323_v34  ;;  %v512_v36 = vpop.f32.mrb[3].mxu0 }
 0x35d   :  { %v330_v37 = vadd.f32 %v329_v32, %v324_v35 }
 0x35f   :  { %v333_v39 = vadd.f32 %v332_v38, %v330_v37 }
 0x361   :  { %v336_v41 = vadd.f32 %v335_v40, %v333_v39 }
 0x363   :  { %337 = vst [vmem:[#allocation7] sm:$0xff] %v336_v41 }
 0x364   :  { %657 = shalt.err (!%p654_p6)
}
 0x365   :  { %s658_s15 = scalar_lea.hbm %s781_s2, 128 }
 0x366   :  { %p659_p7 = scmp.ne.s32.totalorder %s781_s2, %s658_s15  ;;  %p662_p8 = scmp.lt.u32.totalorder %s658_s15, %s781_s2 }
 0x368   :  { %p664_p9 = pnand %p662_p8, %p659_p7 }
 0x36a   :  { %667 = shalt.err (!%p664_p9)
}
 0x36b   :  { %347 = dma.vmem_to_hbm [thread:$0]  %s345_s11, 128, %s781_s2, [#allocation4]  }
 0x36c   :  { %672 = dma.done.wait [#allocation4], 128  }
 0x36d   :  { %673 = vsyncadd [#allocation4], 4294967168 }
 0x36e   :  { %351 = vsyncpa [#allocation3], 1 }
 0x36f   :  { %352 = vsyncpa [#allocation6], 1 }
 0x370   :  { %353 = vsyncpa [#allocation4], 1 }

</bundles_post_ra>
